<compile_context>
chip_gen: v6e
topology: v6e:2x2x1
jax: 0.10.0
libtpu: 0.0.40
codegen_flags: <defaults>
</compile_context>

<pallas_src>
import functools

import jax
import jax.numpy as jnp
from jax import lax
from jax.experimental import pallas as pl
from jax.experimental.pallas import tpu as pltpu

LAYER_NORM_EPS = 1e-12  # BertLayerNorm default eps


def _round_up(x, m):
    return ((x + m - 1) // m) * m


def _rel_lm_head_kernel(feat_ref,   # (TM, H)   activation tile (pipelined)
                        wd_ref,     # (H, H)    dense weight (pre-transposed, resident)
                        bd_ref,     # (1, H)    dense bias
                        lnw_ref,    # (1, H)    layer-norm gamma
                        lnb_ref,    # (1, H)    layer-norm beta
                        wdec_ref,   # (H, Rp)   decoder weight (pre-transposed, padded, resident)
                        bdec_ref,   # (1, Rp)   decoder bias (padded)
                        out_ref,    # (TM, Rp)  output tile
                        *, hidden_size):
    # x = self.dense(features) -- native-dtype MXU matmul, f32 accumulation.
    h = jnp.dot(feat_ref[...], wd_ref[...], preferred_element_type=jnp.float32)
    h = h + bd_ref[...].astype(jnp.float32)

    # x = gelu(x) -- exact (erf-based) GELU, as used by BERT/RoBERTa heads.
    h = 0.5 * h * (1.0 + lax.erf(h * jnp.float32(0.7071067811865476)))

    # x = self.layer_norm(x) -- single-pass statistics over the hidden axis.
    inv_h = jnp.float32(1.0 / hidden_size)
    s1 = jnp.sum(h, axis=-1, keepdims=True)
    s2 = jnp.sum(h * h, axis=-1, keepdims=True)
    mean = s1 * inv_h
    var = jnp.maximum(s2 * inv_h - mean * mean, 0.0)
    inv_std = lax.rsqrt(var + jnp.float32(LAYER_NORM_EPS))   # EUP
    h = (h - mean) * inv_std
    h = h * lnw_ref[...].astype(jnp.float32) + lnb_ref[...].astype(jnp.float32)

    # x = self.decoder(x) -- decoder.bias was re-bound to self.bias, so bias IS added.
    # Cast back to the weight dtype so bf16 weights keep the MXU in bf16 mode.
    out = jnp.dot(h.astype(wdec_ref.dtype), wdec_ref[...],
                  preferred_element_type=jnp.float32)
    out = out + bdec_ref[...].astype(jnp.float32)
    out_ref[...] = out.astype(out_ref.dtype)


def prepare_params(params):
    """One-time (per-model) prep: transpose weights, pad decoder dim to 128 lanes."""
    H = params["w_dense"].shape[0]
    R = params["w_dec"].shape[0]
    Rp = _round_up(R, 128)
    wdec_t = jnp.pad(jnp.transpose(params["w_dec"]), ((0, 0), (0, Rp - R)))  # (H, Rp)
    bdec = jnp.pad(params["b_dec"], (0, Rp - R))                             # (Rp,)
    return {
        "w_dense_t": jnp.transpose(params["w_dense"]),    # (H, H)
        "b_dense": params["b_dense"].reshape(1, H),
        "ln_w": params["ln_w"].reshape(1, H),
        "ln_b": params["ln_b"].reshape(1, H),
        "w_dec_t": wdec_t,                                # (H, Rp)
        "b_dec": bdec.reshape(1, Rp),
        "num_rel": int(R),
    }


def rel_lm_head(features, prepared, *, block_m=512):
    """features: (B, S, H) or (M, H). Returns logits (..., num_rel)."""
    orig_shape = features.shape
    H = orig_shape[-1]
    R = prepared["num_rel"]
    Rp = prepared["w_dec_t"].shape[1]

    feat2d = features.reshape(-1, H)
    M = feat2d.shape[0]

    # Row tile: multiple of 8 sublanes; pad M so the grid divides evenly.
    tm = min(block_m, _round_up(M, 8))
    Mp = _round_up(M, tm)
    if Mp != M:
        feat2d = jnp.pad(feat2d, ((0, Mp - M), (0, 0)))
    grid = (Mp // tm,)

    isz = feat2d.dtype.itemsize
    # Resident weights/biases + double-buffered activation/output tiles + f32 scratch.
    vmem_need = ((H * H + H * Rp + 3 * H + Rp) * isz
                 + 2 * tm * (H + Rp) * isz
                 + 4 * tm * H
                 + (1 << 20))
    vmem_limit = int(min(max(vmem_need, 16 * 1024 * 1024), 100 * 1024 * 1024))

    cost = pl.CostEstimate(
        flops=2 * Mp * H * H + 2 * Mp * H * Rp,
        transcendentals=Mp * H,
        bytes_accessed=(Mp * H + H * H + H * Rp + 3 * H + Rp) * isz + Mp * Rp * isz,
    )

    kernel = functools.partial(_rel_lm_head_kernel, hidden_size=H)

    out = pl.pallas_call(
        kernel,
        out_shape=jax.ShapeDtypeStruct((Mp, Rp), features.dtype),
        grid=grid,
        in_specs=[
            pl.BlockSpec((tm, H), lambda i: (i, 0)),    # features: pipelined over M
            pl.BlockSpec((H, H), lambda i: (0, 0)),     # dense weight: resident
            pl.BlockSpec((1, H), lambda i: (0, 0)),     # dense bias
            pl.BlockSpec((1, H), lambda i: (0, 0)),     # ln gamma
            pl.BlockSpec((1, H), lambda i: (0, 0)),     # ln beta
            pl.BlockSpec((H, Rp), lambda i: (0, 0)),    # decoder weight: resident
            pl.BlockSpec((1, Rp), lambda i: (0, 0)),    # decoder bias
        ],
        out_specs=pl.BlockSpec((tm, Rp), lambda i: (i, 0)),
        compiler_params=pltpu.CompilerParams(
            dimension_semantics=("parallel",),
            vmem_limit_bytes=vmem_limit,
        ),
        cost_estimate=cost,
    )(feat2d, prepared["w_dense_t"], prepared["b_dense"], prepared["ln_w"],
      prepared["ln_b"], prepared["w_dec_t"], prepared["b_dec"])

    out = out[:M, :R]
    return out.reshape(orig_shape[:-1] + (R,))


def init_params(key, hidden_size, num_rel, dtype=jnp.float32):
    k1, k2, k3 = jax.random.split(key, 3)
    scale = 0.02
    return {
        "w_dense": scale * jax.random.normal(k1, (hidden_size, hidden_size), dtype),
        "b_dense": jnp.zeros((hidden_size,), dtype),
        "ln_w": jnp.ones((hidden_size,), dtype),
        "ln_b": jnp.zeros((hidden_size,), dtype),
        "w_dec": scale * jax.random.normal(k2, (num_rel, hidden_size), dtype),
        "b_dec": scale * jax.random.normal(k3, (num_rel,), dtype),
    }


def _reference(features, params):
    """Pure-JAX reference of the PyTorch forward for sanity checking."""
    x = features @ params["w_dense"].T + params["b_dense"]
    x = 0.5 * x * (1.0 + lax.erf(x / jnp.sqrt(2.0)))
    mean = jnp.mean(x, axis=-1, keepdims=True)
    var = jnp.mean((x - mean) ** 2, axis=-1, keepdims=True)
    x = (x - mean) / jnp.sqrt(var + LAYER_NORM_EPS) * params["ln_w"] + params["ln_b"]
    return x @ params["w_dec"].T + params["b_dec"]


if __name__ == "__main__":
    B, S, H, NUM_REL = 2, 8, 32, 24
    key = jax.random.PRNGKey(0)
    k_feat, k_param = jax.random.split(key)

    features = jax.random.normal(k_feat, (B, S, H), jnp.float32)
    params = init_params(k_param, H, NUM_REL)
    prepared = prepare_params(params)   # one-time: transpose + pad (not in hot path)

    out = rel_lm_head(features, prepared)
    out = jax.block_until_ready(out)

    ref = _reference(features, params)
    assert out.shape == (B, S, NUM_REL), out.shape
    assert jnp.allclose(out, ref, atol=1e-3, rtol=1e-3), "mismatch vs reference"

    print("KERNEL_OK")
</pallas_src>

<mosaic_0001>
module attributes {stable_mosaic.version = 11 : i64} {
  func.func @_rel_lm_head_kernel(%arg0: i32, %arg1: memref<16x32xf32, #tpu.memory_space<vmem>>, %arg2: memref<32x32xf32, #tpu.memory_space<vmem>>, %arg3: memref<1x32xf32, #tpu.memory_space<vmem>>, %arg4: memref<1x32xf32, #tpu.memory_space<vmem>>, %arg5: memref<1x32xf32, #tpu.memory_space<vmem>>, %arg6: memref<32x128xf32, #tpu.memory_space<vmem>>, %arg7: memref<1x128xf32, #tpu.memory_space<vmem>>, %arg8: memref<16x128xf32, #tpu.memory_space<vmem>>) attributes {dimension_semantics = [#tpu.dimension_semantics<parallel>], iteration_bounds = array<i64: 1>, scalar_prefetch = 0 : i64, scratch_operands = 0 : i64, tpu.core_type = #tpu.core_type<tc>, window_params = [{transform_indices = @transform_0, window_bounds = array<i64: 16, 32>}, {pipeline_mode = #tpu.pipeline_mode<synchronous>, transform_indices = @transform_1, window_bounds = array<i64: 32, 32>}, {pipeline_mode = #tpu.pipeline_mode<synchronous>, transform_indices = @transform_2, window_bounds = array<i64: 1, 32>}, {pipeline_mode = #tpu.pipeline_mode<synchronous>, transform_indices = @transform_3, window_bounds = array<i64: 1, 32>}, {pipeline_mode = #tpu.pipeline_mode<synchronous>, transform_indices = @transform_4, window_bounds = array<i64: 1, 32>}, {pipeline_mode = #tpu.pipeline_mode<synchronous>, transform_indices = @transform_5, window_bounds = array<i64: 32, 128>}, {pipeline_mode = #tpu.pipeline_mode<synchronous>, transform_indices = @transform_6, window_bounds = array<i64: 1, 128>}, {transform_indices = @transform_7, window_bounds = array<i64: 16, 128>}]} {
    %c0 = arith.constant 0 : index
    %c0_0 = arith.constant 0 : index
    %0 = vector.load %arg1[%c0, %c0_0] : memref<16x32xf32, #tpu.memory_space<vmem>>, vector<16x32xf32>
    %c0_1 = arith.constant 0 : index
    %c0_2 = arith.constant 0 : index
    %1 = vector.load %arg2[%c0_1, %c0_2] : memref<32x32xf32, #tpu.memory_space<vmem>>, vector<32x32xf32>
    %cst = arith.constant dense<0.000000e+00> : vector<16x32xf32>
    %2 = tpu.matmul %0, %1, %cst {dimension_numbers = #tpu.dot_dimension_numbers<[1], [0], [0], [1], [0, 0, 1, 1], [], []>} : vector<16x32xf32>, vector<32x32xf32>, vector<16x32xf32> -> vector<16x32xf32>
    %c0_3 = arith.constant 0 : index
    %c0_4 = arith.constant 0 : index
    %3 = vector.load %arg3[%c0_3, %c0_4] : memref<1x32xf32, #tpu.memory_space<vmem>>, vector<1x32xf32>
    %4 = vector.broadcast %3 : vector<1x32xf32> to vector<16x32xf32>
    %5 = arith.addf %2, %4 : vector<16x32xf32>
    %cst_5 = arith.constant 5.000000e-01 : f32
    %6 = vector.broadcast %cst_5 : f32 to vector<16x32xf32>
    %7 = arith.mulf %6, %5 : vector<16x32xf32>
    %cst_6 = arith.constant 0.707106769 : f32
    %8 = vector.broadcast %cst_6 : f32 to vector<16x32xf32>
    %9 = arith.mulf %5, %8 : vector<16x32xf32>
    %10 = math.erf %9 : vector<16x32xf32>
    %cst_7 = arith.constant 1.000000e+00 : f32
    %11 = vector.broadcast %cst_7 : f32 to vector<16x32xf32>
    %12 = arith.addf %11, %10 : vector<16x32xf32>
    %13 = arith.mulf %7, %12 : vector<16x32xf32>
    %cst_8 = arith.constant dense<0.000000e+00> : vector<16xf32>
    %14 = vector.multi_reduction <add>, %13, %cst_8 [1] : vector<16x32xf32> to vector<16xf32>
    %15 = vector.shape_cast %14 : vector<16xf32> to vector<16x1xf32>
    %16 = arith.mulf %13, %13 : vector<16x32xf32>
    %cst_9 = arith.constant dense<0.000000e+00> : vector<16xf32>
    %17 = vector.multi_reduction <add>, %16, %cst_9 [1] : vector<16x32xf32> to vector<16xf32>
    %18 = vector.shape_cast %17 : vector<16xf32> to vector<16x1xf32>
    %cst_10 = arith.constant 3.125000e-02 : f32
    %19 = vector.broadcast %cst_10 : f32 to vector<16x1xf32>
    %20 = arith.mulf %15, %19 : vector<16x1xf32>
    %cst_11 = arith.constant 3.125000e-02 : f32
    %21 = vector.broadcast %cst_11 : f32 to vector<16x1xf32>
    %22 = arith.mulf %18, %21 : vector<16x1xf32>
    %23 = arith.mulf %20, %20 : vector<16x1xf32>
    %24 = arith.subf %22, %23 : vector<16x1xf32>
    %cst_12 = arith.constant 0.000000e+00 : f32
    %25 = vector.broadcast %cst_12 : f32 to vector<16x1xf32>
    %26 = arith.maximumf %24, %25 : vector<16x1xf32>
    %cst_13 = arith.constant 9.99999996E-13 : f32
    %27 = vector.broadcast %cst_13 : f32 to vector<16x1xf32>
    %28 = arith.addf %26, %27 : vector<16x1xf32>
    %29 = math.rsqrt %28 : vector<16x1xf32>
    %30 = vector.broadcast %20 : vector<16x1xf32> to vector<16x32xf32>
    %31 = arith.subf %13, %30 : vector<16x32xf32>
    %32 = vector.broadcast %29 : vector<16x1xf32> to vector<16x32xf32>
    %33 = arith.mulf %31, %32 : vector<16x32xf32>
    %c0_14 = arith.constant 0 : index
    %c0_15 = arith.constant 0 : index
    %34 = vector.load %arg4[%c0_14, %c0_15] : memref<1x32xf32, #tpu.memory_space<vmem>>, vector<1x32xf32>
    %35 = vector.broadcast %34 : vector<1x32xf32> to vector<16x32xf32>
    %36 = arith.mulf %33, %35 : vector<16x32xf32>
    %c0_16 = arith.constant 0 : index
    %c0_17 = arith.constant 0 : index
    %37 = vector.load %arg5[%c0_16, %c0_17] : memref<1x32xf32, #tpu.memory_space<vmem>>, vector<1x32xf32>
    %38 = vector.broadcast %37 : vector<1x32xf32> to vector<16x32xf32>
    %39 = arith.addf %36, %38 : vector<16x32xf32>
    %c0_18 = arith.constant 0 : index
    %c0_19 = arith.constant 0 : index
    %40 = vector.load %arg6[%c0_18, %c0_19] : memref<32x128xf32, #tpu.memory_space<vmem>>, vector<32x128xf32>
    %cst_20 = arith.constant dense<0.000000e+00> : vector<16x128xf32>
    %41 = tpu.matmul %39, %40, %cst_20 {dimension_numbers = #tpu.dot_dimension_numbers<[1], [0], [0], [1], [0, 0, 1, 1], [], []>} : vector<16x32xf32>, vector<32x128xf32>, vector<16x128xf32> -> vector<16x128xf32>
    %c0_21 = arith.constant 0 : index
    %c0_22 = arith.constant 0 : index
    %42 = vector.load %arg7[%c0_21, %c0_22] : memref<1x128xf32, #tpu.memory_space<vmem>>, vector<1x128xf32>
    %43 = vector.broadcast %42 : vector<1x128xf32> to vector<16x128xf32>
    %44 = arith.addf %41, %43 : vector<16x128xf32>
    %c0_23 = arith.constant 0 : index
    %c0_24 = arith.constant 0 : index
    %45 = vector.load %arg8[%c0_23, %c0_24] : memref<16x128xf32, #tpu.memory_space<vmem>>, vector<16x128xf32>
    tpu.vector_store %arg8[%c0_23, %c0_24], %44 {strides = array<i32>} : memref<16x128xf32, #tpu.memory_space<vmem>>, vector<16x128xf32>,
    return
  }
  func.func @transform_0(%arg0: i32) -> (i32, i32) {
    %c0_i32 = arith.constant 0 : i32
    %c0_i32_0 = arith.constant 0 : i32
    return %arg0, %c0_i32 : i32, i32
  }
  func.func @transform_1(%arg0: i32) -> (i32, i32) {
    %c0_i32 = arith.constant 0 : i32
    %c0_i32_0 = arith.constant 0 : i32
    %c0_i32_1 = arith.constant 0 : i32
    return %c0_i32, %c0_i32_0 : i32, i32
  }
  func.func @transform_2(%arg0: i32) -> (i32, i32) {
    %c0_i32 = arith.constant 0 : i32
    %c0_i32_0 = arith.constant 0 : i32
    %c0_i32_1 = arith.constant 0 : i32
    return %c0_i32, %c0_i32_0 : i32, i32
  }
  func.func @transform_3(%arg0: i32) -> (i32, i32) {
    %c0_i32 = arith.constant 0 : i32
    %c0_i32_0 = arith.constant 0 : i32
    %c0_i32_1 = arith.constant 0 : i32
    return %c0_i32, %c0_i32_0 : i32, i32
  }
  func.func @transform_4(%arg0: i32) -> (i32, i32) {
    %c0_i32 = arith.constant 0 : i32
    %c0_i32_0 = arith.constant 0 : i32
    %c0_i32_1 = arith.constant 0 : i32
    return %c0_i32, %c0_i32_0 : i32, i32
  }
  func.func @transform_5(%arg0: i32) -> (i32, i32) {
    %c0_i32 = arith.constant 0 : i32
    %c0_i32_0 = arith.constant 0 : i32
    %c0_i32_1 = arith.constant 0 : i32
    return %c0_i32, %c0_i32_0 : i32, i32
  }
  func.func @transform_6(%arg0: i32) -> (i32, i32) {
    %c0_i32 = arith.constant 0 : i32
    %c0_i32_0 = arith.constant 0 : i32
    %c0_i32_1 = arith.constant 0 : i32
    return %c0_i32, %c0_i32_0 : i32, i32
  }
  func.func @transform_7(%arg0: i32) -> (i32, i32) {
    %c0_i32 = arith.constant 0 : i32
    %c0_i32_0 = arith.constant 0 : i32
    return %arg0, %c0_i32 : i32, i32
  }
}

</mosaic_0001>

<bundles_post_ra>
// kernel: tpu_custom_call.1
= control target key start
LH: loop header
LB: loop body
LE: loop exit
PB: predicated region body
PF: predicated region fallthrough
CT: control target
= control target key end

     0   :  { %12 = vsyncpa [#allocation3], 0  ;;  %s567_s0 = inlined_call_operand.hbm [shape: f32[16,32], index: 0, kind: input, shape index: {}]   ;;  %s568_s1 = inlined_call_operand.hbm [shape: f32[32,32], index: 1, kind: input, shape index: {}]   ;;  %s569_s2 = inlined_call_operand.vmem [shape: f32[1,32], index: 2, kind: input, shape index: {}]   ;;  %s570_s3 = inlined_call_operand.vmem [shape: f32[1,32], index: 3, kind: input, shape index: {}]   ;;  %s571_s4 = inlined_call_operand.vmem [shape: f32[1,32], index: 4, kind: input, shape index: {}]   ;;  %s572_s5 = inlined_call_operand.hbm [shape: f32[32,128], index: 5, kind: input, shape index: {}]   ;;  %s573_s6 = inlined_call_operand.vmem [shape: f32[1,128], index: 6, kind: input, shape index: {}]   ;;  %s574_s7 = inlined_call_operand.hbm [shape: f32[16,128], index: 7, kind: output, shape index: {}]  }
   0x1   :  { %13 = vsyncpa [#allocation6], 0 }
   0x2   :  { %14 = vsyncpa [#allocation4], 0  ;;  %s477_s24 = smov [#allocation5]   ;;  %s478_s26 = smov [#allocation2]  }
   0x3   :  { %s32_s25 = sshll.u32 %s477_s24, 4  ;;  %s20_s27 = sshll.u32 %s478_s26, 4  ;;  %s33_s25 = int_to_ptr.vmem [resolvable:$true] %s32_s25  ;;  %s21_s27 = int_to_ptr.vmem [resolvable:$true] %s20_s27 }
   0x4   :  { %s399_s28 = scalar_lea.vmem %s33_s25, 512  ;;  %p404_p1 = scmp.lt.s32.totalorder %s33_s25, %s33_s25 }
   0x5   :  { %p400_p0 = scmp.ne.s32.totalorder %s33_s25, %s399_s28  ;;  %p405_p2 = scmp.lt.s32.totalorder %s399_s28, %s399_s28 }
   0x7   :  { %p406_p3 = por %p405_p2, %p404_p1 }
   0x9   :  { %p407_p4 = pnand %p406_p3, %p400_p0 }
   0xb   :  { %410 = shalt.err (!%p407_p4)
}
   0xc   :  { %s479_s29 = smov 128   ;;  %s480_s30 = smov 8  }
   0xd   :  { %38 = dma.hbm_to_vmem [thread:$0]  %s568_s1, 512, %s33_s25, [#allocation6], %s479_s29, %s479_s29, %s480_s30  }
   0xe   :  { %s419_s10 = scalar_lea.vmem %s21_s27, 256  ;;  %p424_p6 = scmp.lt.s32.totalorder %s21_s27, %s21_s27 }
   0xf   :  { %p420_p5 = scmp.ne.s32.totalorder %s21_s27, %s419_s10  ;;  %p425_p7 = scmp.lt.s32.totalorder %s419_s10, %s419_s10 }
  0x11   :  { %p426_p8 = por %p425_p7, %p424_p6 }
  0x13   :  { %p427_p9 = pnand %p426_p8, %p420_p5 }
  0x15   :  { %430 = shalt.err (!%p427_p9)
}
  0x16   :  { %26 = dma.hbm_to_vmem [thread:$0]  %s567_s0, 256, %s21_s27, [#allocation3], %s479_s29, %s479_s29, %s480_s30  }
  0x17   :  { %s481_s13 = smov [#allocation7]  }
  0x18   :  { %s50_s14 = sshll.u32 %s481_s13, 4  ;;  %s51_s14 = int_to_ptr.vmem [resolvable:$true] %s50_s14 }
  0x19   :  { %s439_s15 = scalar_lea.vmem %s51_s14, 512  ;;  %p444_p11 = scmp.lt.s32.totalorder %s51_s14, %s51_s14 }
  0x1a   :  { %p440_p10 = scmp.ne.s32.totalorder %s51_s14, %s439_s15  ;;  %p445_p12 = scmp.lt.s32.totalorder %s439_s15, %s439_s15 }
  0x1c   :  { %p446_p13 = por %p445_p12, %p444_p11 }
  0x1e   :  { %p447_p0 = pnand %p446_p13, %p440_p10 }
  0x20   :  { %450 = shalt.err (!%p447_p0)
}
  0x21   :  { %56 = dma.hbm_to_vmem [thread:$0]  %s572_s5, 512, %s51_s14, [#allocation6], %s479_s29, %s479_s29, %s480_s30  }
  0x22   :  { %471 = dma.done.wait [#allocation3], 256  }
  0x23   :  { %472 = vsyncadd [#allocation3], 4294967040 }
  0x24   :  { %473 = dma.done.wait [#allocation6], 1024  }
  0x25   :  { %474 = vsyncadd [#allocation6], 4294966272  ;;  %vm81_vm0 = vcmask 261120   ;;  %v73_v0 = vld [vmem:[#allocation5 + $0x18] sm:$0xff]  ;;  %v72_v1 = vld [vmem:[#allocation5 + $0x10] sm:$0xff] }
  0x26   :  { %355 = vmatprep.subr.mxu0 %v73_v0  ;;  %v68_v2 = vld [vmem:[#allocation2] sm:$0xff]  ;;  %v71_v3 = vld [vmem:[#allocation5 + $0x8] sm:$0xff]  ;;  %v70_v4 = vld [vmem:[#allocation5] sm:$0xff] }
  0x27   :  { %356 = vmatpush3.msra.mxu0 %v73_v0  ;;  %363 = vmatprep.mubr.msk.f32.mxu0 %vm81_vm0, %v68_v2  ;;  %v69_v5 = vld [vmem:[#allocation2 + $0x8] sm:$0xff]  ;;  %v335_v6 = vld [vmem:[%s569_s2] ss:$0 sm:$0xff]  ;;  %v224_v29 = vld [vmem:[#allocation7 + $0x8] sm:$0xff] }
  0x28   :  { %357 = vmatprep.subr.mxu0 %v72_v1  ;;  %v226_v27 = vld [vmem:[#allocation7 + $0x18] sm:$0xff]  ;;  %v225_v28 = vld [vmem:[#allocation7 + $0x10] sm:$0xff]  ;;  %v223_v30 = vld [vmem:[#allocation7] sm:$0xff] }
  0x29   :  { %358 = vmatpush3.msra.mxu0 %v72_v1  ;;  %366 = vmatprep.subr.mxu1 %v226_v27  ;;  %v338_v49 = vld [vmem:[%s570_s3] ss:$0 sm:$0xff]  ;;  %s482_s3 = smov [#allocation8]  }
  0x2a   :  { %359 = vmatprep.subr.mxu0 %v71_v3  ;;  %367 = vmatpush3.msra.mxu1 %v226_v27  ;;  %v339_v51 = vld [vmem:[%s571_s4] ss:$0 sm:$0xff]  ;;  %s322_s22 = sshll.u32 %s482_s3, 4  ;;  %s323_s22 = int_to_ptr.vmem [resolvable:$true] %s322_s22 }
  0x2b   :  { %360 = vmatpush3.msra.mxu0 %v71_v3  ;;  %368 = vmatprep.subr.mxu1 %v225_v28  ;;  %v340_v59 = vld [vmem:[%s573_s6] ss:$0 sm:$0xff]  ;;  %s451_s4 = scalar_lea.vmem %s323_s22, 256  ;;  %p456_p2 = scmp.lt.s32.totalorder %s323_s22, %s323_s22 }
  0x2c   :  { %361 = vmatprep.subr.mxu0 %v70_v4  ;;  %369 = vmatpush3.msra.mxu1 %v225_v28  ;;  %p452_p1 = scmp.ne.s32.totalorder %s323_s22, %s451_s4  ;;  %p457_p3 = scmp.lt.s32.totalorder %s451_s4, %s451_s4 }
  0x2d   :  { %362 = vmatpush3.msra.mxu0 %v70_v4  ;;  %370 = vmatprep.subr.mxu1 %v224_v29 }
  0x2e   :  { %364 = vmatmul.mubr.msk.f32.vlgmr.msra.gmra.mxu0 %vm81_vm0, %v69_v5  ;;  %371 = vmatpush3.msra.mxu1 %v224_v29  ;;  %p458_p4 = por %p457_p3, %p456_p2 }
  0x2f   :  { %372 = vmatprep.subr.mxu1 %v223_v30 }
  0x30   :  { %373 = vmatpush3.msra.mxu1 %v223_v30  ;;  %p459_p5 = pnand %p458_p4, %p452_p1 }
  0xee   :  { %v365_v7 = vpop.f32.mrf.mxu0 }
  0xef   :  { %v160_v8 = vadd.f32 %v365_v7, %v335_v6 }
  0xf0   :  { %v154_v9 = vpop.f32.mrf.mxu0 }
  0xf1   :  { %v166_v10 = vmul.f32 0.70710677, %v160_v8  ;;  %v155_v11 = vadd.f32 %v335_v6, %v154_v9  ;;  %v164_v16 = vmul.f32 0.5, %v160_v8 }
  0xf3   :  { %383 = verf.f32 %v166_v10  ;;  %v165_v12 = vmul.f32 0.70710677, %v155_v11  ;;  %v163_v17 = vmul.f32 0.5, %v155_v11 }
  0xf5   :  { %385 = verf.f32 %v165_v12 }
 0x100   :  { %v384_v13 = vpop.eup %383 }
 0x101   :  { %v170_v14 = vadd.f32 1.0, %v384_v13 }
 0x102   :  { %v386_v15 = vpop.eup %385 }
 0x103   :  { %v169_v18 = vadd.f32 1.0, %v386_v15  ;;  %v172_v19 = vmul.f32 %v170_v14, %v164_v16 }
 0x105   :  { %v171_v20 = vmul.f32 %v169_v18, %v163_v17  ;;  %v180_v24 = vmul.f32 %v172_v19, %v172_v19  ;;  %v176_v25 = vsel %vm81_vm0, %v172_v19, 0.0 }
 0x107   :  { %v173_v21 = vsel %vm81_vm0, %v171_v20, 0.0  ;;  %v179_v22 = vmul.f32 %v171_v20, %v171_v20  ;;  %v184_v26 = vsel %vm81_vm0, %v180_v24, 0.0 }
 0x108   :  { %174 = vadd.xlane.f32.xlu0 %v173_v21 }
 0x109   :  { %v181_v23 = vsel %vm81_vm0, %v179_v22, 0.0 }
 0x10a   :  { %182 = vadd.xlane.f32.xlu1 %v181_v23 }
 0x10c   :  { %177 = vadd.xlane.f32.xlu0 %v176_v25 }
 0x10e   :  { %185 = vadd.xlane.f32.xlu1 %v184_v26 }
 0x191   :  { %v175_v31 = vpop.xlane.xlu0 %174 }
 0x192   :  { %v187_v32 = vmul.f32 0.03125, %v175_v31 }
 0x193   :  { %v183_v33 = vpop.xlane.xlu1 %182 }
 0x194   :  { %v191_v34 = vmul.f32 %v187_v32, %v187_v32  ;;  %v189_v35 = vmul.f32 0.03125, %v183_v33  ;;  %v201_v47 = vsub.f32 %v171_v20, %v187_v32 }
 0x195   :  { %v178_v36 = vpop.xlane.xlu0 %177 }
 0x196   :  { %v193_v37 = vsub.f32 %v189_v35, %v191_v34  ;;  %v188_v38 = vmul.f32 0.03125, %v178_v36 }
 0x197   :  { %v186_v39 = vpop.xlane.xlu1 %185 }
 0x198   :  { %v195_v40 = vmax.f32 %v193_v37, 0.0  ;;  %v192_v41 = vmul.f32 %v188_v38, %v188_v38  ;;  %v190_v42 = vmul.f32 0.03125, %v186_v39  ;;  %v202_v52 = vsub.f32 %v172_v19, %v188_v38 }
 0x19a   :  { %v197_v43 = vadd.f32 1e-12, %v195_v40  ;;  %v194_v44 = vsub.f32 %v190_v42, %v192_v41 }
 0x19c   :  { %387 = vrsqrt.f32 %v197_v43  ;;  %v196_v45 = vmax.f32 %v194_v44, 0.0 }
 0x19e   :  { %v198_v46 = vadd.f32 1e-12, %v196_v45 }
 0x1a0   :  { %389 = vrsqrt.f32 %v198_v46 }
 0x1a9   :  { %v388_v48 = vpop.eup %387 }
 0x1aa   :  { %v203_v50 = vmul.f32 %v388_v48, %v201_v47 }
 0x1ac   :  { %v212_v53 = vmul.f32 %v338_v49, %v203_v50 }
 0x1ad   :  { %v390_v54 = vpop.eup %389 }
 0x1ae   :  { %v204_v55 = vmul.f32 %v390_v54, %v202_v52  ;;  %v221_v56 = vadd.f32 %v339_v51, %v212_v53 }
 0x1b0   :  { %v213_v57 = vmul.f32 %v338_v49, %v204_v55  ;;  %374 = vmatprep.mubr.msk.f32.mxu1 %vm81_vm0, %v221_v56 }
 0x1b2   :  { %v222_v58 = vadd.f32 %v339_v51, %v213_v57 }
 0x1b4   :  { %375 = vmatmul.mubr.msk.f32.vlgmr.msra.gmra.mxu1 %vm81_vm0, %v222_v58 }
 0x274   :  { %v376_v60 = vpop.f32.mrf.mxu1 }
 0x275   :  { %v312_v61 = vadd.f32 %v376_v60, %v340_v59 }
 0x276   :  { %v306_v62 = vpop.f32.mrf.mxu1 }
 0x277   :  { %316 = vst [vmem:[#allocation8 + $0x8] sm:$0xff] %v312_v61  ;;  %v307_v63 = vadd.f32 %v340_v59, %v306_v62 }
 0x279   :  { %315 = vst [vmem:[#allocation8] sm:$0xff] %v307_v63 }
 0x27a   :  { %462 = shalt.err (!%p459_p5)
}
 0x27b   :  { %328 = dma.vmem_to_hbm [thread:$0]  %s323_s22, 256, %s574_s7, [#allocation4], %s479_s29, %s479_s29, %s480_s30  }
 0x27c   :  { %475 = dma.done.wait [#allocation4], 256  }
 0x27d   :  { %476 = vsyncadd [#allocation4], 4294967040 }
 0x27e   :  { %332 = vsyncpa [#allocation3], 1 }
 0x27f   :  { %333 = vsyncpa [#allocation6], 1 }
 0x280   :  { %334 = vsyncpa [#allocation4], 1 }

</bundles_post_ra>
